<compile_context>
chip_gen: v6e
topology: v6e:2x2x1
jax: 0.10.0
libtpu: 0.0.40
codegen_flags: <defaults>
</compile_context>

<pallas_src>
import functools

import jax
import jax.numpy as jnp
from jax import lax
from jax.experimental import pallas as pl
from jax.experimental.pallas import tpu as pltpu


def _round_up(v, m):
    return (v + m - 1) // m * m


def _vmem_capacity_bytes():
    try:
        return int(pltpu.get_tpu_info().vmem_capacity_bytes)
    except Exception:
        return 64 << 20  # conservative default (v7x per-core VMEM)


def _rgcn_layer_kernel(cnt_ref, inv_ref, x_ref, w_ref, root_ref, o_ref, *, relu):
    """One RGCNConv layer.

    Grid = (row_tiles, k_tiles, R); axis 0 tiles destination nodes (parallel),
    axis 1 tiles the contraction (source-node) dim, axis 2 reduces relations.

    cnt_ref:  (TILE_M, TILE_K)          bf16 integer edge counts for relation r
    inv_ref:  (TILE_M, 1)               f32 1/deg_r for these destination rows
    x_ref:    (TILE_K, F_in_pad)        f32 node features (resident if k_tiles == 1)
    w_ref:    (R, F_in_pad, F_out_pad)  f32 per-relation weights (tiny, resident)
    root_ref: (TILE_M, F_out_pad)       f32 X @ W_root + bias for these rows
    o_ref:    (TILE_M, F_out_pad)       output tile; VMEM-resident accumulator
                                        (block index constant across k and r).
    """
    k = pl.program_id(1)
    r = pl.program_id(2)

    # First step for this row tile: initialise with the root transform + bias.
    @pl.when(jnp.logical_and(k == 0, r == 0))
    def _():
        o_ref[...] = root_ref[...]

    # Aggregate neighbours for relation r over this K chunk (exact integer counts),
    # apply the mean normalisation in f32, then project with W_r on the MXU.
    agg = jnp.dot(cnt_ref[...].astype(jnp.float32), x_ref[...],
                  preferred_element_type=jnp.float32)          # (TILE_M, F_in_pad)
    agg = agg * inv_ref[...]                                   # row-broadcast 1/deg
    o_ref[...] += jnp.dot(agg, w_ref[r], preferred_element_type=jnp.float32)

    # Epilogue on the last reduction step.
    if relu:
        @pl.when(jnp.logical_and(k == pl.num_programs(1) - 1,
                                 r == pl.num_programs(2) - 1))
        def _():
            o_ref[...] = jnp.maximum(o_ref[...], 0.0)


def rgcn_conv(x, counts, inv_deg, comp, basis, w_root, bias, *, relu):
    """RGCNConv forward.

    x:       [N, F_in]            node features
    counts:  [R, N_pad, N_pad]    bf16 integer edge counts (dst rows, src cols)
    inv_deg: [R, N_pad, 1]        f32 1/degree per relation (0 where degree == 0)
    comp:    [R, num_bases];  basis: [num_bases, F_in, F_out]
    w_root:  [F_in, F_out];   bias: [F_out]
    """
    R, n_pad, _ = counts.shape
    N, F_in = x.shape
    F_out = basis.shape[2]
    f32 = jnp.float32
    hp = lax.Precision.HIGHEST

    # Basis decomposition + root transform (tiny matmuls, stay in XLA).
    W = jnp.einsum("rb,bio->rio", comp.astype(f32), basis.astype(f32), precision=hp)
    root = jnp.dot(x.astype(f32), w_root.astype(f32), precision=hp) + bias.astype(f32)

    # Pad the small tensors to lane-dense / (8,128)-aligned shapes. Zero padding is
    # exact: padded feature columns multiply zeroed W rows; padded node rows have
    # zero counts / zero inv_deg and are sliced off below.
    f_in_pad = _round_up(F_in, 128)
    f_out_pad = _round_up(F_out, 128)
    x_p = jnp.pad(x.astype(f32), ((0, n_pad - N), (0, f_in_pad - F_in)))
    w_p = jnp.pad(W, ((0, 0), (0, f_in_pad - F_in), (0, f_out_pad - F_out)))
    root_p = jnp.pad(root, ((0, n_pad - N), (0, f_out_pad - F_out)))

    # Generation-aware tile selection (128 MiB on v5e/v6e, 64 MiB on v7x).
    vmem_cap = _vmem_capacity_bytes()
    budget = int(vmem_cap * 0.7)

    def vmem_need(tm, tk):
        return (2 * tm * tk * 2                      # bf16 counts, double-buffered
                + 2 * tk * f_in_pad * 4              # X blocks
                + 2 * tm * 4                         # inv_deg blocks
                + 2 * R * f_in_pad * f_out_pad * 4   # resident W
                + 2 * tm * f_out_pad * 4             # root blocks
                + 2 * tm * f_out_pad * 4)            # output blocks

    tile_k = 128
    for t in (2048, 1024, 512, 256):
        if n_pad % t == 0:
            tile_k = t
            break

    tile_m = 128
    for t in (1024, 512, 256):
        if n_pad % t == 0 and vmem_need(t, tile_k) <= budget:
            tile_m = t
            break
    while vmem_need(tile_m, tile_k) > budget and tile_k > 128:
        tile_k //= 2

    # Keep >= 2 row tiles so the parallel axis can feed both v7x TensorCores.
    if n_pad // tile_m < 2:
        tile_m = max(n_pad // 2, 16)

    need = vmem_need(tile_m, tile_k)
    vmem_limit = int(min(max(need + (16 << 20), 32 << 20), vmem_cap))

    kernel = functools.partial(_rgcn_layer_kernel, relu=relu)

    out = pl.pallas_call(
        kernel,
        out_shape=jax.ShapeDtypeStruct((n_pad, f_out_pad), f32),
        grid_spec=pltpu.PrefetchScalarGridSpec(
            num_scalar_prefetch=0,
            grid=(n_pad // tile_m, n_pad // tile_k, R),
            in_specs=[
                # bf16 edge counts for relation r: (TILE_M, TILE_K), relation squeezed.
                pl.BlockSpec((pl.Squeezed(), tile_m, tile_k),
                             lambda m, k, r: (r, m, k)),
                # 1/deg for this relation / row tile (constant across k).
                pl.BlockSpec((pl.Squeezed(), tile_m, 1),
                             lambda m, k, r: (r, m, 0)),
                # X chunk: constant across m and r (fully resident when k_tiles == 1).
                pl.BlockSpec((tile_k, f_in_pad), lambda m, k, r: (k, 0)),
                # Full per-relation weight tensor, resident (constant index map).
                pl.BlockSpec((R, f_in_pad, f_out_pad), lambda m, k, r: (0, 0, 0)),
                # Root transform + bias for this row tile (constant across k, r).
                pl.BlockSpec((tile_m, f_out_pad), lambda m, k, r: (m, 0)),
            ],
            out_specs=pl.BlockSpec((tile_m, f_out_pad), lambda m, k, r: (m, 0)),
        ),
        compiler_params=pltpu.CompilerParams(
            dimension_semantics=("parallel", "arbitrary", "arbitrary"),
            vmem_limit_bytes=vmem_limit,
        ),
    )(counts, inv_deg, x_p, w_p, root_p)

    return out[:N, :F_out].astype(x.dtype)


def build_relation_graph(edge_index, edge_type, num_nodes, num_relations):
    """Per-relation edge counts (bf16, built directly at the padded size) plus
    f32 inverse degrees for mean aggregation. Counts <= 256 are exact in bf16."""
    n_pad = _round_up(max(num_nodes, 1), 128)
    src, dst = edge_index[0], edge_index[1]
    counts = jnp.zeros((num_relations, n_pad, n_pad), jnp.float32)
    counts = counts.at[edge_type, dst, src].add(1.0)
    deg = counts.sum(axis=2, keepdims=True)                       # [R, n_pad, 1]
    inv_deg = jnp.where(deg > 0, 1.0 / jnp.where(deg > 0, deg, 1.0), 0.0)
    return counts.astype(jnp.bfloat16), inv_deg.astype(jnp.float32)


def init_rgcn_params(key, in_feats, h_feats, out_feats, num_relations, num_bases=30):
    ks = jax.random.split(key, 8)

    def glorot(k, shape):
        fan_in, fan_out = shape[-2], shape[-1]
        scale = jnp.sqrt(6.0 / (fan_in + fan_out))
        return jax.random.uniform(k, shape, jnp.float32, -scale, scale)

    return {
        "conv1": {
            "basis": glorot(ks[0], (num_bases, in_feats, h_feats)),
            "comp": glorot(ks[1], (num_relations, num_bases)),
            "root": glorot(ks[2], (in_feats, h_feats)),
            "bias": jnp.zeros((h_feats,), jnp.float32),
        },
        "conv2": {
            "basis": glorot(ks[3], (num_bases, h_feats, out_feats)),
            "comp": glorot(ks[4], (num_relations, num_bases)),
            "root": glorot(ks[5], (h_feats, out_feats)),
            "bias": jnp.zeros((out_feats,), jnp.float32),
        },
    }


def rgcn_forward(params, x, counts, inv_deg):
    """Two-layer RGCN: conv1 -> ReLU -> conv2."""
    p1, p2 = params["conv1"], params["conv2"]
    h = rgcn_conv(x, counts, inv_deg, p1["comp"], p1["basis"], p1["root"], p1["bias"],
                  relu=True)
    out = rgcn_conv(h, counts, inv_deg, p2["comp"], p2["basis"], p2["root"], p2["bias"],
                    relu=False)
    return out


if __name__ == "__main__":
    key = jax.random.PRNGKey(0)
    k_x, k_src, k_dst, k_et, k_params = jax.random.split(key, 5)

    # Small synthetic graph.
    num_nodes = 16
    num_edges = 40
    num_relations = 3
    in_feats, h_feats, out_feats = 8, 32, 16

    x = jax.random.normal(k_x, (num_nodes, in_feats), jnp.float32)
    src = jax.random.randint(k_src, (num_edges,), 0, num_nodes)
    dst = jax.random.randint(k_dst, (num_edges,), 0, num_nodes)
    edge_index = jnp.stack([src, dst], axis=0)                              # [2, E]
    edge_type = jax.random.randint(k_et, (num_edges,), 0, num_relations)    # [E]

    counts, inv_deg = build_relation_graph(edge_index, edge_type, num_nodes,
                                           num_relations)
    params = init_rgcn_params(k_params, in_feats, h_feats, out_feats, num_relations,
                              num_bases=30)

    out = jax.block_until_ready(rgcn_forward(params, x, counts, inv_deg))
    assert out.shape == (num_nodes, out_feats)
    assert bool(jnp.all(jnp.isfinite(out)))

    # Pure-JAX reference check of the kernel semantics (mean aggregation + root + bias).
    hp = lax.Precision.HIGHEST
    adj_norm = counts.astype(jnp.float32)[:, :num_nodes, :num_nodes] \
        * inv_deg[:, :num_nodes, :]

    def ref_layer(x_, p, relu):
        W = jnp.einsum("rb,bio->rio", p["comp"], p["basis"], precision=hp)
        msg = jnp.einsum("rij,jf,rfo->io", adj_norm, x_, W, precision=hp)
        o = msg + jnp.dot(x_, p["root"], precision=hp) + p["bias"]
        return jnp.maximum(o, 0.0) if relu else o

    ref = ref_layer(ref_layer(x, params["conv1"], True), params["conv2"], False)
    assert jnp.allclose(out, ref, atol=1e-4, rtol=1e-4)

    print("KERNEL_OK")
</pallas_src>

<mosaic_0001>
module attributes {stable_mosaic.version = 11 : i64} {
  func.func @_rgcn_layer_kernel(%arg0: i32, %arg1: i32, %arg2: i32, %arg3: memref<1x64x128xbf16, #tpu.memory_space<vmem>>, %arg4: memref<1x64x1xf32, #tpu.memory_space<vmem>>, %arg5: memref<128x128xf32, #tpu.memory_space<vmem>>, %arg6: memref<3x128x128xf32, #tpu.memory_space<vmem>>, %arg7: memref<64x128xf32, #tpu.memory_space<vmem>>, %arg8: memref<64x128xf32, #tpu.memory_space<vmem>>) attributes {dimension_semantics = [#tpu.dimension_semantics<parallel>, #tpu.dimension_semantics<arbitrary>, #tpu.dimension_semantics<arbitrary>], iteration_bounds = array<i64: 2, 1, 3>, scalar_prefetch = 0 : i64, scratch_operands = 0 : i64, tpu.core_type = #tpu.core_type<tc>, window_params = [{transform_indices = @transform_0, window_bounds = array<i64: 1, 64, 128>}, {transform_indices = @transform_1, window_bounds = array<i64: 1, 64, 1>}, {transform_indices = @transform_2, window_bounds = array<i64: 128, 128>}, {pipeline_mode = #tpu.pipeline_mode<synchronous>, transform_indices = @transform_3, window_bounds = array<i64: 3, 128, 128>}, {transform_indices = @transform_4, window_bounds = array<i64: 64, 128>}, {transform_indices = @transform_5, window_bounds = array<i64: 64, 128>}]} {
    %c0_i32 = arith.constant 0 : i32
    %0 = arith.cmpi eq, %arg1, %c0_i32 : i32
    %c0_i32_0 = arith.constant 0 : i32
    %1 = arith.cmpi eq, %arg2, %c0_i32_0 : i32
    %2 = arith.andi %0, %1 : i1
    %3 = arith.extui %2 : i1 to i32
    %c0_i32_1 = arith.constant 0 : i32
    %4 = arith.cmpi ne, %3, %c0_i32_1 : i32
    scf.if %4 {
      %c0_18 = arith.constant 0 : index
      %c0_19 = arith.constant 0 : index
      %26 = vector.load %arg7[%c0_18, %c0_19] : memref<64x128xf32, #tpu.memory_space<vmem>>, vector<64x128xf32>
      %c0_20 = arith.constant 0 : index
      %c0_21 = arith.constant 0 : index
      %27 = vector.load %arg8[%c0_20, %c0_21] : memref<64x128xf32, #tpu.memory_space<vmem>>, vector<64x128xf32>
      tpu.vector_store %arg8[%c0_20, %c0_21], %26 {strides = array<i32>} : memref<64x128xf32, #tpu.memory_space<vmem>>, vector<64x128xf32>,
    } else {
    }
    %c0 = arith.constant 0 : index
    %c0_2 = arith.constant 0 : index
    %c0_3 = arith.constant 0 : index
    %5 = vector.load %arg3[%c0, %c0_2, %c0_3] : memref<1x64x128xbf16, #tpu.memory_space<vmem>>, vector<1x64x128xbf16>
    %6 = vector.shape_cast %5 : vector<1x64x128xbf16> to vector<64x128xbf16>
    %7 = arith.extf %6 : vector<64x128xbf16> to vector<64x128xf32>
    %c0_4 = arith.constant 0 : index
    %c0_5 = arith.constant 0 : index
    %8 = vector.load %arg5[%c0_4, %c0_5] : memref<128x128xf32, #tpu.memory_space<vmem>>, vector<128x128xf32>
    %cst = arith.constant dense<0.000000e+00> : vector<64x128xf32>
    %9 = tpu.matmul %7, %8, %cst {dimension_numbers = #tpu.dot_dimension_numbers<[1], [0], [0], [1], [0, 0, 1, 1], [], []>} : vector<64x128xf32>, vector<128x128xf32>, vector<64x128xf32> -> vector<64x128xf32>
    %c0_6 = arith.constant 0 : index
    %c0_7 = arith.constant 0 : index
    %c0_8 = arith.constant 0 : index
    %10 = vector.load %arg4[%c0_6, %c0_7, %c0_8] : memref<1x64x1xf32, #tpu.memory_space<vmem>>, vector<1x64x1xf32>
    %11 = vector.shape_cast %10 : vector<1x64x1xf32> to vector<64x1xf32>
    %12 = vector.broadcast %11 : vector<64x1xf32> to vector<64x128xf32>
    %13 = arith.mulf %9, %12 : vector<64x128xf32>
    %c0_9 = arith.constant 0 : index
    %c0_10 = arith.constant 0 : index
    %14 = vector.load %arg8[%c0_9, %c0_10] : memref<64x128xf32, #tpu.memory_space<vmem>>, vector<64x128xf32>
    %15 = arith.index_cast %arg2 : i32 to index
    %c0_11 = arith.constant 0 : index
    %c0_12 = arith.constant 0 : index
    %16 = vector.load %arg6[%15, %c0_11, %c0_12] : memref<3x128x128xf32, #tpu.memory_space<vmem>>, vector<1x128x128xf32>
    %17 = vector.shape_cast %16 : vector<1x128x128xf32> to vector<128x128xf32>
    %cst_13 = arith.constant dense<0.000000e+00> : vector<64x128xf32>
    %18 = tpu.matmul %13, %17, %cst_13 {dimension_numbers = #tpu.dot_dimension_numbers<[1], [0], [0], [1], [0, 0, 1, 1], [], []>} : vector<64x128xf32>, vector<128x128xf32>, vector<64x128xf32> -> vector<64x128xf32>
    %19 = arith.addf %14, %18 : vector<64x128xf32>
    %c0_14 = arith.constant 0 : index
    %c0_15 = arith.constant 0 : index
    %20 = vector.load %arg8[%c0_14, %c0_15] : memref<64x128xf32, #tpu.memory_space<vmem>>, vector<64x128xf32>
    tpu.vector_store %arg8[%c0_14, %c0_15], %19 {strides = array<i32>} : memref<64x128xf32, #tpu.memory_space<vmem>>, vector<64x128xf32>,
    %c0_i32_16 = arith.constant 0 : i32
    %21 = arith.cmpi eq, %arg1, %c0_i32_16 : i32
    %c2_i32 = arith.constant 2 : i32
    %22 = arith.cmpi eq, %arg2, %c2_i32 : i32
    %23 = arith.andi %21, %22 : i1
    %24 = arith.extui %23 : i1 to i32
    %c0_i32_17 = arith.constant 0 : i32
    %25 = arith.cmpi ne, %24, %c0_i32_17 : i32
    scf.if %25 {
      %c0_18 = arith.constant 0 : index
      %c0_19 = arith.constant 0 : index
      %26 = vector.load %arg8[%c0_18, %c0_19] : memref<64x128xf32, #tpu.memory_space<vmem>>, vector<64x128xf32>
      %cst_20 = arith.constant 0.000000e+00 : f32
      %27 = vector.broadcast %cst_20 : f32 to vector<64x128xf32>
      %28 = arith.maximumf %26, %27 : vector<64x128xf32>
      %c0_21 = arith.constant 0 : index
      %c0_22 = arith.constant 0 : index
      %29 = vector.load %arg8[%c0_21, %c0_22] : memref<64x128xf32, #tpu.memory_space<vmem>>, vector<64x128xf32>
      tpu.vector_store %arg8[%c0_21, %c0_22], %28 {strides = array<i32>} : memref<64x128xf32, #tpu.memory_space<vmem>>, vector<64x128xf32>,
    } else {
    }
    return
  }
  func.func @transform_0(%arg0: i32, %arg1: i32, %arg2: i32) -> (i32, i32, i32) {
    %c0_i32 = arith.constant 0 : i32
    return %arg2, %arg0, %arg1 : i32, i32, i32
  }
  func.func @transform_1(%arg0: i32, %arg1: i32, %arg2: i32) -> (i32, i32, i32) {
    %c0_i32 = arith.constant 0 : i32
    %c0_i32_0 = arith.constant 0 : i32
    return %arg2, %arg0, %c0_i32 : i32, i32, i32
  }
  func.func @transform_2(%arg0: i32, %arg1: i32, %arg2: i32) -> (i32, i32) {
    %c0_i32 = arith.constant 0 : i32
    %c0_i32_0 = arith.constant 0 : i32
    return %arg1, %c0_i32 : i32, i32
  }
  func.func @transform_3(%arg0: i32, %arg1: i32, %arg2: i32) -> (i32, i32, i32) {
    %c0_i32 = arith.constant 0 : i32
    %c0_i32_0 = arith.constant 0 : i32
    %c0_i32_1 = arith.constant 0 : i32
    %c0_i32_2 = arith.constant 0 : i32
    return %c0_i32, %c0_i32_0, %c0_i32_1 : i32, i32, i32
  }
  func.func @transform_4(%arg0: i32, %arg1: i32, %arg2: i32) -> (i32, i32) {
    %c0_i32 = arith.constant 0 : i32
    %c0_i32_0 = arith.constant 0 : i32
    return %arg0, %c0_i32 : i32, i32
  }
  func.func @transform_5(%arg0: i32, %arg1: i32, %arg2: i32) -> (i32, i32) {
    %c0_i32 = arith.constant 0 : i32
    %c0_i32_0 = arith.constant 0 : i32
    return %arg0, %c0_i32 : i32, i32
  }
}

</mosaic_0001>

<bundles_post_ra>
// kernel: tpu_custom_call.1
= control target key start
LH: loop header
LB: loop body
LE: loop exit
PB: predicated region body
PF: predicated region fallthrough
CT: control target
= control target key end

     0   :  { %s1865_s0 = inlined_call_operand.hbm [shape: bf16[3,128,128], index: 0, kind: input, shape index: {}]   ;;  %s1866_s1 = inlined_call_operand.vmem [shape: f32[3,128,1], index: 1, kind: input, shape index: {}]   ;;  %s1867_s2 = inlined_call_operand.hbm [shape: f32[128,128], index: 2, kind: input, shape index: {}]   ;;  %s1868_s3 = inlined_call_operand.vmem [shape: f32[3,128,128], index: 3, kind: input, shape index: {}]   ;;  %s1869_s4 = inlined_call_operand.hbm [shape: f32[128,128], index: 4, kind: input, shape index: {}]   ;;  %s1870_s5 = inlined_call_operand.hbm [shape: f32[128,128], index: 5, kind: output, shape index: {}]  }
   0x1   :  { %1882 = sst [smem:[#allocation16_spill]] %s1865_s0 }
   0x2   :  { %1883 = sst [smem:[#allocation17_spill]] %s1866_s1 }
   0x3   :  { %1884 = sst [smem:[#allocation18_spill]] %s1867_s2 }
   0x4   :  { %1885 = sst [smem:[#allocation19_spill]] %s1868_s3 }
   0x5   :  { %1886 = sst [smem:[#allocation20_spill]] %s1870_s5 }
   0x6   :  { %10 = vsyncpa [#allocation3], 0 }
   0x7   :  { %12 = vsyncpa [#allocation3 + $0x1], 0 }
   0x8   :  { %13 = vsyncpa [#allocation6], 0 }
   0x9   :  { %14 = vsyncpa [#allocation4], 0 }
   0xa   :  { %16 = vsyncpa [#allocation4 + $0x1], 0  ;;  %s1484_s18 = smov 0   ;;  %s1486_s19 = smov 0  }
   0xb   :  { %s1488_s20 = smov 0   ;;  %s1490_s21 = smov 0  }
   0xc   :  { %s1492_s22 = smov 0   ;;  %s1494_s23 = smov 0  }
   0xd   :  { %s1496_s24 = smov 0   ;;  %s1498_s25 = smov 0  }
   0xe   :  { %s1500_s26 = smov 0   ;;  %s1502_s27 = smov 0  }
   0xf   :  { %s1504_s28 = smov 0  }
  0x10 LB: > { %1887 = sst [smem:[#allocation13_spill]] %s1425_s24  ;;  %s34_s29 = sadd.s32 1, %s1433_s26  ;;  %s1441_s28 = sphi %s1504_s28, %s22_s28   ;;  %s1437_s27 = sphi %s1502_s27, %s1925_s27   ;;  %s1433_s26 = sphi %s1500_s26, %s1924_s26   ;;  %s1429_s25 = sphi %s1498_s25, %s1923_s25   ;;  %s1425_s24 = sphi %s1496_s24, %s1922_s24   ;;  %s1421_s23 = sphi %s1494_s23, %s1921_s23   ;;  %s1417_s22 = sphi %s1492_s22, %s1920_s22   ;;  %s1413_s21 = sphi %s1490_s21, %s1919_s21   ;;  %s1409_s20 = sphi %s1488_s20, %s1918_s20   ;;  %s1405_s19 = sphi %s1486_s19, %s1917_s19   ;;  %s1401_s18 = sphi %s1484_s18, %s1916_s18  }
  0x11   : > { %s41_s30 = sadd.s32 1, %s1437_s27  ;;  %p35_p0 = scmp.ge.s32.totalorder %s34_s29, 3 }
  0x12   : > { %s52_s6 = sadd.s32 1, %s1421_s23  ;;  %p59_p1 = scmp.ne.s32.totalorder %s1421_s23, %s1417_s22 }
  0x13   : > { %p1877_p2 = scmp.eq.s32.totalorder %s1441_s28, 0  ;;  %s1927_s29 = smov (%p35_p0, %s34_s29), 0 }
  0x14   : > { %1888 = sst [smem:[#allocation14_spill]] %s1927_s29  ;;  %s1929_s30 = smov (!%p35_p0, %s41_s30), %s1437_s27 }
  0x15   : > { %s45_s7 = ssub.s32 %s1433_s26, %s1927_s29  ;;  %p1552_p3 = por %p1877_p2, %p59_p1 }
  0x16   : > { %p43_p4 = scmp.ge.s32.totalorder %s1929_s30, 2  ;;  %p1876_p5 = scmp.lt.s32.totalorder %s1441_s28, 6 }
  0x17   : > { %s235_s9 = sand.u32 1, %s1441_s28   ;;  %s237_s10 = sand.u32 1, %s1421_s23  }
  0x18   : > { %s1931_s30 = smov (%p43_p4, %s1929_s30), 0  ;;  %s922_s12 = sshll.u32 %s237_s10, 5 }
  0x19   : > { %1890 = sst [smem:[#allocation15_spill]] %s1931_s30  ;;  %s1563_s11 = ssub.s32 %s1437_s27, %s1931_s30 }
  0x1a   : > { %s47_s13 = sor.u32 %s1563_s11, %s45_s7  ;;  %p151_p6 = scmp.eq.s32.totalorder %s1563_s11, 0 }
  0x1b   : > { %p50_p7 = scmp.eq.s32.totalorder %s47_s13, 0  ;;  %s923_s14 = sshll.u32 %s1437_s27, 3 }
  0x1c   : > { %s924_s15 = sshll.u32 %s1433_s26, 4  ;;  %s239_s29 = scalar_lea.vmem [#allocation2], %s922_s12 }
  0x1d   : > { %s1570_s16 = scalar_select %p50_p7, %s1421_s23, %s52_s6  }
  0x1e   : > { %s246_s17 = sadd.s32 %s924_s15, %s923_s14  ;;  %s249_s5 = sshll.u32 %s239_s29, 4  ;;  %s250_s5 = int_to_ptr.vmem [resolvable:$true] %s249_s5 }
  0x1f   : > { %s925_s3 = sshll.u32 %s246_s17, 6  ;;  %s1891_s0 = sld [smem:[#allocation16_spill]] }
  0x20   : > { %p1579_p8 = pnand %p1876_p5, %p1552_p3  ;;  %s1583_s7 = scalar_lea.sflag [#allocation3], %s235_s9 }
  0x21   : > { %s1244_s6 = scalar_lea.vmem %s250_s5, 512  ;;  %s1443_s29 = smov [#allocation2]  }
  0x22   : > { %p1233_p9 = pneg %p1579_p8  ;;  %p1245_p10 = scmp.ne.s32.totalorder %s250_s5, %s1244_s6 }
  0x23   : > { %s1249_s12 = sshll.u32 %s1443_s29, 4  ;;  %s1250_s12 = int_to_ptr.vmem [resolvable:$false] %s1249_s12 }
  0x24   : > { %p1247_p11 = pnand %p1245_p10, %p1233_p9  ;;  %s1251_s1 = scalar_lea.vmem %s1250_s12, 1024 }
  0x25   : > { %s248_s30 = scalar_lea.hbm %s1891_s0, %s925_s3  ;;  %p1252_p13 = scmp.lt.s32.totalorder %s250_s5, %s1250_s12 }
  0x26   : > { %p1248_p12 = pneg %p1247_p11  ;;  %p1253_p0 = scmp.lt.s32.totalorder %s1251_s1, %s1244_s6 }
  0x28   : > { %p1254_p1 = por %p1253_p0, %p1252_p13 }
  0x2a   : > { %p1255_p3 = pnand %p1254_p1, %p1248_p12 }
  0x2c   : > { %1258 = shalt.err (!%p1255_p3)
}
  0x2d   : > { %s1444_s3 = smov 64   ;;  %s1445_s24 = smov 4  }
  0x2e   : > { %1121 = dma.hbm_to_vmem [thread:$0]  (!%p1579_p8), %s248_s30, 512, %s250_s5, %s1583_s7, %s1444_s3, %s1444_s3, %s1445_s24  }
  0x2f   : > { %s1591_s8 = sadd.s32 4294967295, %s1441_s28   ;;  %s918_s9 = sadd.s32 4294967294, %s1441_s28  }
  0x30   : > { %p65_p4 = scmp.ne.s32.totalorder %s1417_s22, %s1413_s21  ;;  %p66_p7 = scmp.eq.s32.totalorder %s1591_s8, 0 }
  0x31   : > { %p166_p9 = scmp.ne.s32.totalorder %s1405_s19, %s1401_s18  ;;  %p196_p11 = scmp.eq.s32.totalorder %s918_s9, 5 }
  0x32   : > { %p1602_p8 = por %p66_p7, %p65_p4  ;;  %p919_p0 = scmp.ge.s32.totalorder %s1441_s28, 1 }
  0x33   : > { %p1608_p12 = por %p166_p9, %p66_p7  ;;  %p1612_p13 = por %p196_p11, %p166_p9 }
  0x34   : > { %s1893_s5 = scalar_select %p1602_p8, 1, 0 }
  0x35   : > { %s1894_s30 = scalar_select %p1608_p12, 1, 0 }
  0x36   : > { %s1895_s21 = scalar_select %p1612_p13, 1, 0 }
  0x37   : > { %p203_p1 = scmp.lt.s32.totalorder %s1441_s28, 7  ;;  %s1446_s14 = smov [#allocation5]  }
  0x38   : > { %s218_s15 = sshll.u32 %s1446_s14, 4  ;;  %s945_s17 = sshll.u32 %s1437_s27, 10  ;;  %s219_s15 = int_to_ptr.vmem [resolvable:$true] %s218_s15 }
  0x39   : > { %p1618_p3 = pnand %p919_p0, %p203_p1  ;;  %s153_s6 = sadd.s32 1, %s1409_s20 }
  0x3a   : > { %s1635_s29 = scalar_select %p151_p6, %s1409_s20, %s153_s6  }
  0x3b   : > { %p1114_p4 = pneg %p1618_p3  ;;  %p160_p9 = scmp.ne.s32.totalorder %s1409_s20, %s1405_s19 }
  0x3c   : > { %s1270_s12 = scalar_lea.vmem %s219_s15, 2048  ;;  %p1278_p2 = scmp.lt.s32.totalorder %s219_s15, %s219_s15 }
  0x3d   : > { %p1627_p5 = pnand %p1114_p4, %p66_p7  ;;  %p1271_p0 = scmp.ne.s32.totalorder %s219_s15, %s1270_s12 }
  0x3e   : > { %p1279_p13 = scmp.lt.s32.totalorder %s1270_s12, %s1270_s12 }
  0x3f   : > { %p1261_p11 = pneg %p1627_p5 }
  0x40   : > { %p1280_p12 = por %p1279_p13, %p1278_p2 }
  0x41   : > { %p1273_p1 = pnand %p1271_p0, %p1261_p11 }
  0x43   : > { %p1274_p10 = pneg %p1273_p1 }
  0x45   : > { %p1281_p8 = pnand %p1280_p12, %p1274_p10 }
  0x47   : > { %1284 = shalt.err (!%p1281_p8)
}
  0x48   : > { %s1880_s1 = smov 128   ;;  %s1881_s11 = smov 8  }
  0x49   : > { %s1898_s2 = sld [smem:[#allocation18_spill]]  ;;  %p1899_p2 = scmp.eq.s32.totalorder %s1441_s28, 0 }
  0x4a   : > { %p1900_p10 = scmp.eq.s32.totalorder %s1591_s8, 5  ;;  %s274_s14 = sand.u32 1, %s1409_s20  }
  0x4b   : > { %p162_p6 = por %p160_p9, %p1899_p2  ;;  %s926_s6 = sshll.u32 %s274_s14, 6 }
  0x4c   : > { %p1659_p8 = por %p1900_p10, %p160_p9  ;;  %p1902_p12 = scmp.lt.s32.totalorder %s1441_s28, 6 }
  0x4d   : > { %s276_s3 = scalar_lea.vmem [#allocation7], %s926_s6  ;;  %s1449_s14 = smov [#allocation7]  }
  0x4e   : > { %p1666_p13 = pnand %p1902_p12, %p162_p6  ;;  %s283_s24 = sshll.u32 %s276_s3, 4  ;;  %s284_s24 = int_to_ptr.vmem [resolvable:$true] %s283_s24 }
  0x4f   : > { %1117 = dma.hbm_to_vmem [thread:$0]  (!%p1627_p5), %s1898_s2, 2048, %s219_s15, [#allocation6], %s1880_s1, %s1880_s1, %s1881_s11  }
  0x50   : > { %s282_s15 = scalar_lea.hbm %s1869_s4, %s945_s17  ;;  %p1287_p5 = pneg %p1666_p13 }
  0x51   : > { %s1298_s1 = scalar_lea.vmem %s284_s24, 1024  ;;  %s1303_s11 = sshll.u32 %s1449_s14, 4  ;;  %s1304_s11 = int_to_ptr.vmem [resolvable:$false] %s1303_s11 }
  0x52   : > { %p1299_p4 = scmp.ne.s32.totalorder %s284_s24, %s1298_s1  ;;  %s1305_s2 = scalar_lea.vmem %s1304_s11, 2048 }
  0x53   : > { %p1306_p0 = scmp.lt.s32.totalorder %s284_s24, %s1304_s11  ;;  %p1307_p1 = scmp.lt.s32.totalorder %s1305_s2, %s1298_s1 }
  0x54   : > { %p1301_p9 = pnand %p1299_p4, %p1287_p5 }
  0x55   : > { %p1308_p2 = por %p1307_p1, %p1306_p0 }
  0x56   : > { %p1302_p11 = pneg %p1301_p9 }
  0x58   : > { %p1309_p6 = pnand %p1308_p2, %p1302_p11 }
  0x5a   : > { %1312 = shalt.err (!%p1309_p6)
}
  0x5b   : > { %s1904_s0 = smov 8   ;;  %s1905_s17 = smov 128  }
  0x5c   : > { %1124 = dma.hbm_to_vmem [thread:$0]  (!%p1666_p13), %s282_s15, 1024, %s284_s24, %s1583_s7, %s1905_s17, %s1905_s17, %s1904_s0  }
  0x5d   : > { %295 = sbr.rel (%p1618_p3) target bundleno = 593 (0x251), region = 40  ;;  %s297_s6 = sand.u32 (!%p1618_p3), 1, %s1591_s8  }
  0x5e   : > { %s299_s12 = sand.u32 (!%p1618_p3), 1, %s1417_s22   ;;  %s298_s2 = scalar_lea.sflag (!%p1618_p3), [#allocation3], %s297_s6 }
  0x5f   : > { %s930_s11 = sshll.u32 (!%p1618_p3), %s299_s12, 5  ;;  %p1906_p10 = scmp.ne.s32.totalorder (!%p1618_p3), %s1893_s5, 0 }
  0x60   : > { %s1685_s1 = scalar_lea.vmem (!%p1618_p3), [#allocation2], %s930_s11 }
  0x62   : > { %1384 = dma.done.wait (%p1906_p10), %s298_s2, 512  }
  0x63   : > { %1386 = vsyncadd (%p1906_p10), %s298_s2, 4294966784 }
  0x64   : > { %1388 = dma.done.wait (%p66_p7), [#allocation6], 2048  }
  0x65   : > { %1390 = vsyncadd (%p66_p7), [#allocation6], 4294965248  ;;  %s312_s7 = sand.u32 1, %s1405_s19   ;;  %p1907_p3 = scmp.ne.s32.totalorder %s1894_s30, 0 }
  0x66   : > { %s932_s13 = sshll.u32 %s312_s7, 6 }
  0x67   : > { %s314_s10 = scalar_lea.vmem [#allocation7], %s932_s13 }
  0x68   : > { %1392 = dma.done.wait (%p1907_p3), %s298_s2, 1024  }
  0x69   : > { %1394 = vsyncadd (%p1907_p3), %s298_s2, 4294966272  ;;  %s1908_s5 = sld [smem:[#allocation13_spill]]  ;;  %s934_s15 = sshll.u32 %s1429_s25, 3 }
  0x6a   : > { %p359_p13 = scmp.lt.s32.totalorder %s934_s15, 15  ;;  %s1909_s17 = sld [smem:[#allocation17_spill]] }
  0x6b   : > { %s1711_s30 = scalar_lea.vmem [#allocation8], %s932_s13 }
  0x6c   : > { %s1935_s15 = smov (!%p359_p13, %s934_s15), 15 }
  0x6f   : > { %p357_p12 = scmp.lt.s32.totalorder %s1908_s5, 2  ;;  %p370_p7 = scmp.eq.s32.totalorder %s1908_s5, 0 }
  0x70   : > { %v375_v0 = vld [vmem:[%s314_s10] sm:$0xff] (%p370_p7)  ;;  %v376_v1 = vld [vmem:[%s314_s10 + $0x8] sm:$0xff] (%p370_p7)  ;;  %v377_v2 = vld [vmem:[%s314_s10 + $0x10] sm:$0xff] (%p370_p7) }
  0x71   : > { %s1933_s5 = smov (!%p357_p12, %s1908_s5), 2  ;;  %374 = sbr.rel (!%p370_p7) target bundleno = 118 (0x76), region = 56  ;;  %383 = vst [vmem:[%s1711_s30] sm:$0xff] (%p370_p7), %v375_v0  ;;  %384 = vst [vmem:[%s1711_s30 + $0x8] sm:$0xff] (%p370_p7), %v376_v1  ;;  %v378_v3 = vld [vmem:[%s314_s10 + $0x18] sm:$0xff] (%p370_p7)  ;;  %v379_v4 = vld [vmem:[%s314_s10 + $0x20] sm:$0xff] (%p370_p7) }
  0x72   : > { %s935_s8 = sshll.u32 %s1933_s5, 4  ;;  %385 = vst [vmem:[%s1711_s30 + $0x10] sm:$0xff] (%p370_p7), %v377_v2  ;;  %v380_v5 = vld [vmem:[%s314_s10 + $0x28] sm:$0xff] (%p370_p7)  ;;  %386 = vst [vmem:[%s1711_s30 + $0x18] sm:$0xff] (%p370_p7), %v378_v3  ;;  %v381_v6 = vld [vmem:[%s314_s10 + $0x30] sm:$0xff] (%p370_p7) }
  0x73   : > { %s362_s3 = sadd.s32 %s935_s8, %s1935_s15  ;;  %387 = vst [vmem:[%s1711_s30 + $0x20] sm:$0xff] (%p370_p7), %v379_v4  ;;  %388 = vst [vmem:[%s1711_s30 + $0x28] sm:$0xff] (%p370_p7), %v380_v5  ;;  %v382_v7 = vld [vmem:[%s314_s10 + $0x38] sm:$0xff] (%p370_p7) }
  0x74   : > { %s936_s24 = sshll.u32 %s362_s3, 3  ;;  %389 = vst [vmem:[%s1711_s30 + $0x30] sm:$0xff] (%p370_p7), %v381_v6  ;;  %390 = vst [vmem:[%s1711_s30 + $0x38] sm:$0xff] (%p370_p7), %v382_v7 }
  0x75   : > { %s1709_s6 = scalar_lea.vmem %s1909_s17, %s936_s24 }
  0x76 PF: > { %v422_v8 = vld [vmem:[#allocation5 + $0x78] sm:$0xff]  ;;  %s1910_s12 = sld [smem:[#allocation13_spill]]  ;;  %v421_v9 = vld [vmem:[#allocation5 + $0x70] sm:$0xff]  ;;  %v1450_v10 = vmov 0   ;;  %v420_v11 = vld [vmem:[#allocation5 + $0x68] sm:$0xff] }
  0x77   : > { %1016 = vmatprep.subr.mxu0 %v422_v8  ;;  %1229 = vset.pattern.permute.xlu0 %v1450_v10  ;;  %v419_v12 = vld [vmem:[#allocation5 + $0x60] sm:$0xff]  ;;  %v418_v14 = vld [vmem:[#allocation5 + $0x58] sm:$0xff]  ;;  %s1911_s10 = sld [smem:[#allocation19_spill]]  ;;  %v530_v17 = vld [vmem:[%s1709_s6 + $0x10] sm:$0xff] }
  0x78   : > { %1017 = vmatpush3.msra.mxu0 %v422_v8  ;;  %1230 = vset.pattern.permute.xlu1 %v1450_v10  ;;  %v1723_v13 = vld [vmem:[%s1685_s1] sm:$0xff]   ;;  %v417_v18 = vld [vmem:[#allocation5 + $0x50] sm:$0xff]  ;;  %v529_v19 = vld [vmem:[%s1709_s6 + $0x8] sm:$0xff] }
  0x79   : > { %1018 = vmatprep.subr.mxu0 %v421_v9  ;;  %v951_v15 = vunpack.c.l.bf16 %v1723_v13  ;;  %v528_v16 = vld [vmem:[%s1709_s6] sm:$0xff]  ;;  %548 = vperm.xlu1 %1230, %v530_v17   ;;  %v416_v21 = vld [vmem:[#allocation5 + $0x48] sm:$0xff]  ;;  %v531_v22 = vld [vmem:[%s1709_s6 + $0x18] sm:$0xff]  ;;  %v952_v44 = vunpack.c.h.bf16 %v1723_v13 }
  0x7a   : > { %1019 = vmatpush3.msra.mxu0 %v421_v9  ;;  %538 = vperm.xlu0 %1229, %v528_v16   ;;  %v415_v24 = vld [vmem:[#allocation5 + $0x40] sm:$0xff]  ;;  %v414_v26 = vld [vmem:[#allocation5 + $0x38] sm:$0xff]  ;;  %v533_v27 = vld [vmem:[%s1709_s6 + $0x28] sm:$0xff] }
  0x7b   : > { %1020 = vmatprep.subr.mxu0 %v420_v11  ;;  %1048 = vmatprep.mubr.f32.mxu0 %v951_v15  ;;  %v532_v25 = vld [vmem:[%s1709_s6 + $0x20] sm:$0xff]  ;;  %v413_v29 = vld [vmem:[#allocation5 + $0x30] sm:$0xff]  ;;  %v412_v31 = vld [vmem:[#allocation5 + $0x28] sm:$0xff] }
  0x7c   : > { %s938_s11 = sshll.u32 %s1910_s12, 7  ;;  %1021 = vmatpush3.msra.mxu0 %v420_v11  ;;  %v534_v30 = vld [vmem:[%s1709_s6 + $0x30] sm:$0xff]  ;;  %v535_v32 = vld [vmem:[%s1709_s6 + $0x38] sm:$0xff]  ;;  %v411_v34 = vld [vmem:[#allocation5 + $0x20] sm:$0xff]  ;;  %p731_p5 = scmp.eq.s32.totalorder %s1910_s12, 2 }
  0x7d   : > { %s1730_s5 = scalar_lea.vmem %s1911_s10, %s938_s11  ;;  %1022 = vmatprep.subr.mxu0 %v419_v12  ;;  %553 = vperm.xlu1 %1230, %v531_v22   ;;  %v410_v36 = vld [vmem:[#allocation5 + $0x18] sm:$0xff]  ;;  %v409_v38 = vld [vmem:[#allocation5 + $0x10] sm:$0xff]  ;;  %v408_v40 = vld [vmem:[#allocation5 + $0x8] sm:$0xff] }
  0x7e   : > { %1023 = vmatpush3.msra.mxu0 %v419_v12  ;;  %v609_v20 = vld [vmem:[%s1730_s5 + $0x78] sm:$0xff]  ;;  %543 = vperm.xlu0 %1229, %v529_v19   ;;  %v608_v23 = vld [vmem:[%s1730_s5 + $0x70] sm:$0xff]  ;;  %v607_v28 = vld [vmem:[%s1730_s5 + $0x68] sm:$0xff] }
  0x7f   : > { %1024 = vmatprep.subr.mxu0 %v418_v14  ;;  %1060 = vmatprep.subr.mxu1 %v609_v20  ;;  %v606_v33 = vld [vmem:[%s1730_s5 + $0x60] sm:$0xff]  ;;  %v605_v35 = vld [vmem:[%s1730_s5 + $0x58] sm:$0xff]  ;;  %v604_v37 = vld [vmem:[%s1730_s5 + $0x50] sm:$0xff] }
  0x80   : > { %1025 = vmatpush3.msra.mxu0 %v418_v14  ;;  %1061 = vmatpush3.msra.mxu1 %v609_v20  ;;  %v603_v39 = vld [vmem:[%s1730_s5 + $0x48] sm:$0xff]  ;;  %v602_v42 = vld [vmem:[%s1730_s5 + $0x40] sm:$0xff]  ;;  %v601_v45 = vld [vmem:[%s1730_s5 + $0x38] sm:$0xff] }
  0x81   : > { %1026 = vmatprep.subr.mxu0 %v417_v18  ;;  %1062 = vmatprep.subr.mxu1 %v608_v23  ;;  %v965_v41 = vld [vmem:[%s1685_s1 + $0x8] sm:$0xff]   ;;  %v407_v43 = vld [vmem:[#allocation5] sm:$0xff]  ;;  %v966_v47 = vld [vmem:[%s1685_s1 + $0x10] sm:$0xff]  }
  0x82   : > { %1027 = vmatpush3.msra.mxu0 %v417_v18  ;;  %558 = vperm.xlu0 %1229, %v532_v25   ;;  %v955_v46 = vunpack.c.l.bf16 %v965_v41  ;;  %v600_v48 = vld [vmem:[%s1730_s5 + $0x30] sm:$0xff]  ;;  %v956_v49 = vunpack.c.h.bf16 %v965_v41  ;;  %v599_v50 = vld [vmem:[%s1730_s5 + $0x28] sm:$0xff]  ;;  %v959_v51 = vunpack.c.l.bf16 %v966_v47  ;;  %v967_v52 = vld [vmem:[%s1685_s1 + $0x18] sm:$0xff]   ;;  %v960_v54 = vunpack.c.h.bf16 %v966_v47 }
  0x83   : > { %1028 = vmatprep.subr.mxu0 %v416_v21  ;;  %1063 = vmatpush3.msra.mxu1 %v608_v23  ;;  %v598_v53 = vld [vmem:[%s1730_s5 + $0x20] sm:$0xff]  ;;  %v597_v55 = vld [vmem:[%s1730_s5 + $0x18] sm:$0xff]  ;;  %v963_v56 = vunpack.c.l.bf16 %v967_v52  ;;  %v964_v57 = vunpack.c.h.bf16 %v967_v52  ;;  %v596_v58 = vld [vmem:[%s1730_s5 + $0x10] sm:$0xff] }
  0x84   : > { %1029 = vmatpush3.msra.mxu0 %v416_v21  ;;  %563 = vperm.xlu1 %1230, %v533_v27   ;;  %v595_v59 = vld [vmem:[%s1730_s5 + $0x8] sm:$0xff]  ;;  %v594_v60 = vld [vmem:[%s1730_s5] sm:$0xff]  ;;  %v590_v41 = vld [vmem:[%s1711_s30 + $0x30] sm:$0xff] }
  0x85   : > { %1030 = vmatprep.subr.mxu0 %v415_v24  ;;  %1064 = vmatprep.subr.mxu1 %v607_v28  ;;  %v585_v21 = vld [vmem:[%s1711_s30 + $0x8] sm:$0xff]  ;;  %v584_v23 = vld [vmem:[%s1711_s30] sm:$0xff] }
  0x86   : > { %1031 = vmatpush3.msra.mxu0 %v415_v24  ;;  %568 = vperm.xlu0 %1229, %v534_v30  }
  0x87   : > { %1032 = vmatprep.subr.mxu0 %v414_v26  ;;  %1065 = vmatpush3.msra.mxu1 %v607_v28 }
  0x88   : > { %1033 = vmatpush3.msra.mxu0 %v414_v26  ;;  %573 = vperm.xlu1 %1230, %v535_v32   ;;  %v587_v26 = vld [vmem:[%s1711_s30 + $0x18] sm:$0xff]  ;;  %v589_v32 = vld [vmem:[%s1711_s30 + $0x28] sm:$0xff] }
  0x89   : > { %1034 = vmatprep.subr.mxu0 %v413_v29  ;;  %1066 = vmatprep.subr.mxu1 %v606_v33 }
  0x8a   : > { %1035 = vmatpush3.msra.mxu0 %v413_v29  ;;  %1067 = vmatpush3.msra.mxu1 %v606_v33  ;;  %v586_v29 = vld [vmem:[%s1711_s30 + $0x10] sm:$0xff] }
  0x8b   : > { %1036 = vmatprep.subr.mxu0 %v412_v31  ;;  %1068 = vmatprep.subr.mxu1 %v605_v35 }
  0x8c   : > { %1037 = vmatpush3.msra.mxu0 %v412_v31  ;;  %1069 = vmatpush3.msra.mxu1 %v605_v35  ;;  %v588_v35 = vld [vmem:[%s1711_s30 + $0x20] sm:$0xff] }
  0x8d   : > { %1038 = vmatprep.subr.mxu0 %v411_v34  ;;  %1070 = vmatprep.subr.mxu1 %v604_v37 }
  0x8e   : > { %1039 = vmatpush3.msra.mxu0 %v411_v34  ;;  %1071 = vmatpush3.msra.mxu1 %v604_v37 }
  0x8f   : > { %1040 = vmatprep.subr.mxu0 %v410_v36  ;;  %1072 = vmatprep.subr.mxu1 %v603_v39 }
  0x90   : > { %1041 = vmatpush3.msra.mxu0 %v410_v36  ;;  %1073 = vmatpush3.msra.mxu1 %v603_v39 }
  0x91   : > { %1042 = vmatprep.subr.mxu0 %v409_v38  ;;  %1074 = vmatprep.subr.mxu1 %v602_v42 }
  0x92   : > { %1043 = vmatpush3.msra.mxu0 %v409_v38  ;;  %1075 = vmatpush3.msra.mxu1 %v602_v42  ;;  %v591_v38 = vld [vmem:[%s1711_s30 + $0x38] sm:$0xff] }
  0x93   : > { %1044 = vmatprep.subr.mxu0 %v408_v40  ;;  %1076 = vmatprep.subr.mxu1 %v601_v45 }
  0x94   : > { %1045 = vmatpush3.msra.mxu0 %v408_v40  ;;  %1077 = vmatpush3.msra.mxu1 %v601_v45 }
  0x95   : > { %1046 = vmatprep.subr.mxu0 %v407_v43  ;;  %1078 = vmatprep.subr.mxu1 %v600_v48 }
  0x96   : > { %1047 = vmatpush3.msra.mxu0 %v407_v43  ;;  %1079 = vmatpush3.msra.mxu1 %v600_v48 }
  0x97   : > { %1049 = vmatmul.mubr.f32.vlgmr.msra.gmra.mxu0 %v952_v44  ;;  %1080 = vmatprep.subr.mxu1 %v599_v50 }
  0x98   : > { %1051 = vmatprep.mubr.f32.mxu0 %v955_v46  ;;  %1081 = vmatpush3.msra.mxu1 %v599_v50 }
  0x99   : > { %1082 = vmatprep.subr.mxu1 %v598_v53 }
  0x9a   : > { %1083 = vmatpush3.msra.mxu1 %v598_v53 }
  0x9b   : > { %1052 = vmatmul.mubr.f32.gmra.mxu0 %v956_v49  ;;  %1084 = vmatprep.subr.mxu1 %v597_v55 }
  0x9c   : > { %1054 = vmatprep.mubr.f32.mxu0 %v959_v51  ;;  %1085 = vmatpush3.msra.mxu1 %v597_v55 }
  0x9d   : > { %1086 = vmatprep.subr.mxu1 %v596_v58 }
  0x9e   : > { %1087 = vmatpush3.msra.mxu1 %v596_v58 }
  0x9f   : > { %1055 = vmatmul.mubr.f32.gmra.mxu0 %v960_v54  ;;  %1088 = vmatprep.subr.mxu1 %v595_v59 }
  0xa0   : > { %1057 = vmatprep.mubr.f32.mxu0 %v963_v56  ;;  %1089 = vmatpush3.msra.mxu1 %v595_v59 }
  0xa1   : > { %1090 = vmatprep.subr.mxu1 %v594_v60 }
  0xa2   : > { %1091 = vmatpush3.msra.mxu1 %v594_v60 }
  0xa3   : > { %1058 = vmatmul.mubr.f32.gmra.mxu0 %v964_v57 }
  0xf4   : > { %v549_v62 = vpop.permute.xlu1 %548 }
  0xf5   : > { %v539_v61 = vpop.permute.xlu0 %538 }
  0xf8   : > { %v554_v2 = vpop.permute.xlu1 %553 }
  0xf9   : > { %v544_v0 = vpop.permute.xlu0 %543 }
  0xfd   : > { %v559_v8 = vpop.permute.xlu0 %558 }
  0xff   : > { %v564_v11 = vpop.permute.xlu1 %563 }
 0x101   : > { %v569_v16 = vpop.permute.xlu0 %568 }
 0x103   : > { %v574_v18 = vpop.permute.xlu1 %573 }
 0x157   : > { %v1050_v63 = vpop.f32.mrf.mxu0 }
 0x158   : > { %v577_v4 = vmul.f32 %v1050_v63, %v544_v0 }
 0x159   : > { %v489_v1 = vpop.f32.mrf.mxu0 }
 0x15a   : > { %v576_v3 = vmul.f32 %v539_v61, %v489_v1 }
 0x15b   : > { %v1053_v5 = vpop.f32.mrf.mxu0 }
 0x15c   : > { %1092 = vmatprep.mubr.f32.mxu1 %v576_v3  ;;  %v579_v9 = vmul.f32 %v1053_v5, %v554_v2 }
 0x15d   : > { %v499_v6 = vpop.f32.mrf.mxu0  ;;  %1093 = vmatmul.mubr.f32.vlgmr.msra.gmra.mxu1 %v577_v4 }
 0x15e   : > { %v578_v7 = vmul.f32 %v549_v62, %v499_v6 }
 0x15f   : > { %v1056_v10 = vpop.f32.mrf.mxu0 }
 0x160   : > { %1095 = vmatprep.mubr.f32.mxu1 %v578_v7  ;;  %v581_v14 = vmul.f32 %v1056_v10, %v564_v11 }
 0x161   : > { %v509_v12 = vpop.f32.mrf.mxu0  ;;  %1096 = vmatmul.mubr.f32.gmra.mxu1 %v579_v9 }
 0x162   : > { %v580_v13 = vmul.f32 %v559_v8, %v509_v12 }
 0x163   : > { %v1059_v15 = vpop.f32.mrf.mxu0 }
 0x164   : > { %1098 = vmatprep.mubr.f32.mxu1 %v580_v13  ;;  %v583_v20 = vmul.f32 %v1059_v15, %v574_v18 }
 0x165   : > { %v519_v17 = vpop.f32.mrf.mxu0  ;;  %1099 = vmatmul.mubr.f32.gmra.mxu1 %v581_v14 }
 0x166   : > { %v582_v19 = vmul.f32 %v569_v16, %v519_v17 }
 0x168   : > { %1101 = vmatprep.mubr.f32.mxu1 %v582_v19 }
 0x169   : > { %1102 = vmatmul.mubr.f32.gmra.mxu1 %v583_v20 }
 0x21d   : > { %v1094_v22 = vpop.f32.mrf.mxu1 }
 0x21e   : > { %v716_v24 = vadd.f32 %v1094_v22, %v585_v21 }
 0x21f   : > { %v676_v25 = vpop.f32.mrf.mxu1 }
 0x220   : > { %724 = vst [vmem:[%s1711_s30 + $0x8] sm:$0xff] %v716_v24  ;;  %v715_v27 = vadd.f32 %v676_v25, %v584_v23 }
 0x221   : > { %v1097_v28 = vpop.f32.mrf.mxu1 }
 0x222   : > { %723 = vst [vmem:[%s1711_s30] sm:$0xff] %v715_v27  ;;  %v718_v30 = vadd.f32 %v1097_v28, %v587_v26 }
 0x223   : > { %v686_v31 = vpop.f32.mrf.mxu1 }
 0x224   : > { %726 = vst [vmem:[%s1711_s30 + $0x18] sm:$0xff] %v718_v30  ;;  %v717_v33 = vadd.f32 %v686_v31, %v586_v29 }
 0x225   : > { %v1100_v34 = vpop.f32.mrf.mxu1 }
 0x226   : > { %725 = vst [vmem:[%s1711_s30 + $0x10] sm:$0xff] %v717_v33  ;;  %v720_v36 = vadd.f32 %v1100_v34, %v589_v32 }
 0x227   : > { %v696_v37 = vpop.f32.mrf.mxu1  ;;  %v737_v46 = vld [vmem:[%s1711_s30 + $0x8] sm:$0xff] (%p731_p5) }
 0x228   : > { %728 = vst [vmem:[%s1711_s30 + $0x28] sm:$0xff] %v720_v36  ;;  %v719_v39 = vadd.f32 %v696_v37, %v588_v35  ;;  %v745_v49 = vmax.f32 (%p731_p5), %v737_v46, 0.0 }
 0x229   : > { %v1103_v40 = vpop.f32.mrf.mxu1  ;;  %v736_v45 = vld [vmem:[%s1711_s30] sm:$0xff] (%p731_p5) }
 0x22a   : > { %727 = vst [vmem:[%s1711_s30 + $0x20] sm:$0xff] %v719_v39  ;;  %v722_v42 = vadd.f32 %v1103_v40, %v591_v38  ;;  %735 = sbr.rel (!%p731_p5) target bundleno = 569 (0x239), region = 60  ;;  %v744_v48 = vmax.f32 (%p731_p5), %v736_v45, 0.0  ;;  %753 = vst [vmem:[%s1711_s30 + $0x8] sm:$0xff] (%p731_p5), %v745_v49 }
 0x22b   : > { %v706_v43 = vpop.f32.mrf.mxu1  ;;  %v739_v51 = vld [vmem:[%s1711_s30 + $0x18] sm:$0xff] (%p731_p5) }
 0x22c   : > { %730 = vst [vmem:[%s1711_s30 + $0x38] sm:$0xff] %v722_v42  ;;  %v721_v44 = vadd.f32 %v706_v43, %v590_v41  ;;  %v747_v54 = vmax.f32 (%p731_p5), %v739_v51, 0.0  ;;  %752 = vst [vmem:[%s1711_s30] sm:$0xff] (%p731_p5), %v744_v48 }
 0x22d   : > { %v738_v47 = vld [vmem:[%s1711_s30 + $0x10] sm:$0xff] (%p731_p5) }
 0x22e   : > { %729 = vst [vmem:[%s1711_s30 + $0x30] sm:$0xff] %v721_v44  ;;  %v746_v50 = vmax.f32 (%p731_p5), %v738_v47, 0.0  ;;  %755 = vst [vmem:[%s1711_s30 + $0x18] sm:$0xff] (%p731_p5), %v747_v54 }
 0x22f   : > { %v741_v53 = vld [vmem:[%s1711_s30 + $0x28] sm:$0xff] }
 0x230   : > { %v749_v56 = vmax.f32 %v741_v53, 0.0  ;;  %754 = vst [vmem:[%s1711_s30 + $0x10] sm:$0xff] %v746_v50 }
 0x231   : > { %v740_v52 = vld [vmem:[%s1711_s30 + $0x20] sm:$0xff] }
 0x232   : > { %v748_v55 = vmax.f32 %v740_v52, 0.0  ;;  %757 = vst [vmem:[%s1711_s30 + $0x28] sm:$0xff] %v749_v56 }
 0x233   : > { %v743_v58 = vld [vmem:[%s1711_s30 + $0x38] sm:$0xff] }
 0x234   : > { %v751_v60 = vmax.f32 %v743_v58, 0.0  ;;  %756 = vst [vmem:[%s1711_s30 + $0x20] sm:$0xff] %v748_v55 }
 0x235   : > { %v742_v57 = vld [vmem:[%s1711_s30 + $0x30] sm:$0xff] }
 0x236   : > { %v750_v59 = vmax.f32 %v742_v57, 0.0  ;;  %759 = vst [vmem:[%s1711_s30 + $0x38] sm:$0xff] %v751_v60 }
 0x238   : > { %758 = vst [vmem:[%s1711_s30 + $0x30] sm:$0xff] %v750_v59 }
 0x239 PF: > { %s948_s1 = sshll.u32 %s1429_s25, 10  ;;  %s1912_s3 = sld [smem:[#allocation20_spill]] }
 0x23a   : > { %s774_s14 = sshll.u32 %s1711_s30, 4  ;;  %s1805_s0 = scalar_lea.sflag [#allocation4], %s312_s7  ;;  %s1801_s14 = int_to_ptr.vmem [resolvable:$true] %s774_s14 }
 0x23b   : > { %s1313_s17 = scalar_lea.vmem %s1801_s14, 1024  ;;  %s1451_s25 = smov [#allocation8]  }
 0x23c   : > { %p1314_p4 = scmp.ne.s32.totalorder %s1801_s14, %s1313_s17  ;;  %s1317_s6 = sshll.u32 %s1451_s25, 4  ;;  %s1318_s6 = int_to_ptr.vmem [resolvable:$false] %s1317_s6 }
 0x23d   : > { %s1319_s12 = scalar_lea.vmem %s1318_s6, 2048  ;;  %p1320_p0 = scmp.lt.s32.totalorder %s1801_s14, %s1318_s6 }
 0x23e   : > { %p1315_p9 = pnand %p1314_p4, %p1659_p8  ;;  %p1321_p1 = scmp.lt.s32.totalorder %s1319_s12, %s1313_s17 }
 0x23f   : > { %s1798_s24 = scalar_lea.hbm %s1912_s3, %s948_s1 }
 0x240   : > { %p1316_p11 = pneg %p1315_p9  ;;  %p1322_p2 = por %p1321_p1, %p1320_p0 }
 0x242   : > { %p1323_p6 = pnand %p1322_p2, %p1316_p11 }
 0x244   : > { %1326 = shalt.err (!%p1323_p6)
}
 0x245   : > { %s1327_s7 = scalar_lea.hbm %s1798_s24, 1024  ;;  %s1331_s2 = scalar_lea.hbm %s1912_s3, 2048 }
 0x246   : > { %p1328_p10 = scmp.ne.s32.totalorder %s1798_s24, %s1327_s7  ;;  %p1332_p13 = scmp.lt.s32.totalorder %s1798_s24, %s1912_s3 }
 0x247   : > { %p1333_p7 = scmp.lt.s32.totalorder %s1331_s2, %s1327_s7 }
 0x248   : > { %p1329_p3 = pnand %p1328_p10, %p1659_p8 }
 0x249   : > { %p1334_p5 = por %p1333_p7, %p1332_p13 }
 0x24a   : > { %p1330_p12 = pneg %p1329_p3 }
 0x24c   : > { %p1335_p4 = pnand %p1334_p5, %p1330_p12 }
 0x24e   : > { %1338 = shalt.err (!%p1335_p4)
}
 0x24f   : > { %s1452_s5 = smov 128   ;;  %s1453_s1 = smov 8  }
 0x250   : > { %1112 = dma.vmem_to_hbm [thread:$0]  (%p1659_p8), %s1801_s14, 1024, %s1798_s24, %s1805_s0, %s1452_s5, %s1452_s5, %s1453_s1  }
 0x251 PF: > { %p1132_p9 = scmp.ge.s32.totalorder %s1441_s28, 2  ;;  %s789_s15 = sand.u32 1, %s1401_s18  }
 0x252   : > { %p1913_p11 = scmp.ne.s32.totalorder %s1895_s21, 0  ;;  %s790_s8 = scalar_lea.sflag [#allocation4], %s789_s15 }
 0x254   : > { %p1126_p0 = pnand %p1132_p9, %p1913_p11 }
 0x256   : > { %p1127_p1 = pneg %p1126_p0 }
 0x258   : > { %1396 = dma.done.wait (%p1127_p1), %s790_s8, 1024  }
 0x259   : > { %1398 = vsyncadd (%p1127_p1), %s790_s8, 4294966272  ;;  %s22_s28 = sadd.s32 1, %s1441_s28   ;;  %s1914_s9 = sld [smem:[#allocation14_spill]] }
 0x25a   : > { %p19_p2 = scmp.ge.s32.totalorder %s22_s28, 8   ;;  %s1915_s14 = sld [smem:[#allocation15_spill]] }
 0x25b   : > { %s1916_s18 = smov %s1405_s19  ;;  %s1917_s19 = smov %s1409_s20 }
 0x25c   : > { %s1918_s20 = smov %s1635_s29  ;;  %s1919_s21 = smov %s1417_s22 }
 0x25d   : > { %s1920_s22 = smov %s1421_s23  ;;  %s1921_s23 = smov %s1570_s16 }
 0x25e   : > { %s1922_s24 = smov %s1433_s26  ;;  %s1923_s25 = smov %s1437_s27 }
 0x25f   : > { %s1924_s26 = smov %s1914_s9  ;;  %21 = sbr.rel (!%p19_p2) target bundleno = 16 (0x10), region = 113 }
 0x260   : > { %s1925_s27 = smov %s1915_s14 }
 0x264   :  { %795 = vsyncpa [#allocation3], 1 }
 0x265   :  { %797 = vsyncpa [#allocation3 + $0x1], 1 }
 0x266   :  { %798 = vsyncpa [#allocation6], 1 }
 0x267   :  { %799 = vsyncpa [#allocation4], 1 }
 0x268   :  { %801 = vsyncpa [#allocation4 + $0x1], 1 }

</bundles_post_ra>
